<compile_context>
chip_gen: v6e
topology: v6e:2x2x1
jax: 0.10.0
libtpu: 0.0.40
codegen_flags: <defaults>
</compile_context>

<pallas_src>
import functools
import math

import jax
import jax.numpy as jnp
from jax.experimental import pallas as pl
from jax.experimental.pallas import tpu as pltpu

_LANES = 1024            # 8 sublanes * 128 lanes -> one full f32 vreg per row
_MAX_BLOCK_ROWS = 1024   # 1024 x 1024 elems = 4 MiB f32 per block
_MIN_BLOCKS = 4          # keep >= 4 blocks so v7x's 2 TensorCores both work
_VMEM_LIMIT_BYTES = 32 * 1024 * 1024


def _cosine_cutoff_kernel(d_ref, o_ref, *, scale):
    # scale = pi / cutoff, closed over as a compile-time constant.
    d = d_ref[...].astype(jnp.float32)
    o_ref[...] = (0.5 * jnp.cos(d * scale) + 0.5).astype(o_ref.dtype)


def cosine_cutoff(distances: jax.Array, cutoff: float,
                  *, max_block_rows: int = _MAX_BLOCK_ROWS,
                  donate: bool = False) -> jax.Array:
    """Pallas equivalent of CutoffCosine.forward(distances, cutoff)."""
    orig_shape = distances.shape
    orig_dtype = distances.dtype

    flat = distances.reshape(-1)          # contiguous -> free layout plumbing
    n = flat.shape[0]
    if n == 0:
        return distances

    # Pad to a multiple of 1024 so the data can be viewed as lane-dense
    # (rows, 1024) 2-D tiles.  Pad amount is < 1024 elements; when n is
    # already a multiple of 1024 this is a zero-copy reshape.
    pad = (-n) % _LANES
    if pad:
        flat = jnp.pad(flat, (0, pad))
    rows = (n + pad) // _LANES
    x2d = flat.reshape(rows, _LANES)

    if rows <= 8:
        # Full-extent block along rows (always legal, single grid step).
        block_rows = rows
    else:
        # Aim for >= _MIN_BLOCKS grid steps (v7x megacore sharding) while
        # capping the block at max_block_rows; keep it a multiple of 8 so the
        # (8, 128) layout constraint is satisfied for non-full blocks.
        target = max(8, min(max_block_rows, pl.cdiv(rows, _MIN_BLOCKS)))
        block_rows = (target // 8) * 8

    grid = (pl.cdiv(rows, block_rows),)
    kernel = functools.partial(_cosine_cutoff_kernel,
                               scale=math.pi / float(cutoff))

    itemsize = jnp.dtype(orig_dtype).itemsize
    cost = pl.CostEstimate(flops=3 * n, transcendentals=n,
                           bytes_accessed=2 * n * itemsize)

    out = pl.pallas_call(
        kernel,
        out_shape=jax.ShapeDtypeStruct((rows, _LANES), orig_dtype),
        grid=grid,
        in_specs=[pl.BlockSpec((block_rows, _LANES), lambda i: (i, 0))],
        out_specs=pl.BlockSpec((block_rows, _LANES), lambda i: (i, 0)),
        compiler_params=pltpu.CompilerParams(
            dimension_semantics=("parallel",),
            vmem_limit_bytes=_VMEM_LIMIT_BYTES,
        ),
        cost_estimate=cost,
        input_output_aliases={0: 0} if donate else {},
    )(x2d)

    flat_out = out.reshape(-1)
    if pad:
        flat_out = flat_out[:n]
    return flat_out.reshape(orig_shape)


if __name__ == "__main__":
    cutoff = 5.2  # typical torchani radial cutoff (Angstrom)
    k1, k2, k3 = jax.random.split(jax.random.PRNGKey(0), 3)

    def ref_fn(d):
        return 0.5 * jnp.cos(d * (math.pi / cutoff)) + 0.5

    # Case 1: small flat pair list, not a multiple of 1024 (pad path, 1 row).
    n1 = 1000
    d1 = jax.random.uniform(k1, (n1,), dtype=jnp.float32,
                            minval=0.0, maxval=cutoff)
    out1 = jax.block_until_ready(cosine_cutoff(d1, cutoff))
    assert out1.shape == d1.shape and out1.dtype == d1.dtype
    assert jnp.allclose(out1, ref_fn(d1), atol=1e-6, rtol=1e-6)

    # Case 2: multi-block path with a ragged final row-block
    # (n2 -> 38 rows of 1024; block_rows = 8 -> grid = 5, last block masked).
    n2 = 37 * 1024 + 500
    d2 = jax.random.uniform(k2, (n2,), dtype=jnp.float32,
                            minval=0.0, maxval=cutoff)
    out2 = jax.block_until_ready(cosine_cutoff(d2, cutoff))
    assert out2.shape == d2.shape and out2.dtype == d2.dtype
    assert jnp.allclose(out2, ref_fn(d2), atol=1e-6, rtol=1e-6)

    # Case 3: non-flat input shape (e.g. a (molecules, pairs) distance grid).
    d3 = jax.random.uniform(k3, (8, 125), dtype=jnp.float32,
                            minval=0.0, maxval=cutoff)
    out3 = jax.block_until_ready(cosine_cutoff(d3, cutoff))
    assert out3.shape == d3.shape and out3.dtype == d3.dtype
    assert jnp.allclose(out3, ref_fn(d3), atol=1e-6, rtol=1e-6)

    print("KERNEL_OK")
</pallas_src>

<mosaic_0001>
module attributes {stable_mosaic.version = 11 : i64} {
  func.func @_cosine_cutoff_kernel(%arg0: i32, %arg1: memref<1x1024xf32, #tpu.memory_space<vmem>>, %arg2: memref<1x1024xf32, #tpu.memory_space<vmem>>) attributes {dimension_semantics = [#tpu.dimension_semantics<parallel>], iteration_bounds = array<i64: 1>, scalar_prefetch = 0 : i64, scratch_operands = 0 : i64, tpu.core_type = #tpu.core_type<tc>, window_params = [{transform_indices = @transform_0, window_bounds = array<i64: 1, 1024>}, {transform_indices = @transform_1, window_bounds = array<i64: 1, 1024>}]} {
    %c0 = arith.constant 0 : index
    %c0_0 = arith.constant 0 : index
    %0 = vector.load %arg1[%c0, %c0_0] : memref<1x1024xf32, #tpu.memory_space<vmem>>, vector<1x1024xf32>
    %cst = arith.constant 0.604152441 : f32
    %1 = vector.broadcast %cst : f32 to vector<1x1024xf32>
    %2 = arith.mulf %0, %1 : vector<1x1024xf32>
    %3 = math.cos %2 : vector<1x1024xf32>
    %cst_1 = arith.constant 5.000000e-01 : f32
    %4 = vector.broadcast %cst_1 : f32 to vector<1x1024xf32>
    %5 = arith.mulf %4, %3 : vector<1x1024xf32>
    %cst_2 = arith.constant 5.000000e-01 : f32
    %6 = vector.broadcast %cst_2 : f32 to vector<1x1024xf32>
    %7 = arith.addf %5, %6 : vector<1x1024xf32>
    %c0_3 = arith.constant 0 : index
    %c0_4 = arith.constant 0 : index
    %8 = vector.load %arg2[%c0_3, %c0_4] : memref<1x1024xf32, #tpu.memory_space<vmem>>, vector<1x1024xf32>
    tpu.vector_store %arg2[%c0_3, %c0_4], %7 {strides = array<i32>} : memref<1x1024xf32, #tpu.memory_space<vmem>>, vector<1x1024xf32>,
    return
  }
  func.func @transform_0(%arg0: i32) -> (i32, i32) {
    %c0_i32 = arith.constant 0 : i32
    %c0_i32_0 = arith.constant 0 : i32
    return %arg0, %c0_i32 : i32, i32
  }
  func.func @transform_1(%arg0: i32) -> (i32, i32) {
    %c0_i32 = arith.constant 0 : i32
    %c0_i32_0 = arith.constant 0 : i32
    return %arg0, %c0_i32 : i32, i32
  }
}

</mosaic_0001>

<bundles_post_ra>
// kernel: tpu_custom_call.1
= control target key start
LH: loop header
LB: loop body
LE: loop exit
PB: predicated region body
PF: predicated region fallthrough
CT: control target
= control target key end

     0   :  { %6 = vsyncpa [#allocation3], 0  ;;  %s253_s0 = inlined_call_operand.hbm [shape: f32[1,1024], index: 0, kind: input, shape index: {}]   ;;  %s254_s1 = inlined_call_operand.hbm [shape: f32[1,1024], index: 1, kind: output, shape index: {}]  }
   0x1   :  { %7 = vsyncpa [#allocation4], 0  ;;  %s208_s6 = smov [#allocation2]  }
   0x2   :  { %s14_s7 = sshll.u32 %s208_s6, 4  ;;  %s15_s7 = int_to_ptr.vmem [resolvable:$true] %s14_s7 }
   0x3   :  { %s172_s8 = scalar_lea.vmem %s15_s7, 128  ;;  %p177_p1 = scmp.lt.s32.totalorder %s15_s7, %s15_s7 }
   0x4   :  { %p173_p0 = scmp.ne.s32.totalorder %s15_s7, %s172_s8  ;;  %p178_p2 = scmp.lt.s32.totalorder %s172_s8, %s172_s8 }
   0x6   :  { %p179_p3 = por %p178_p2, %p177_p1 }
   0x8   :  { %p180_p4 = pnand %p179_p3, %p173_p0 }
   0xa   :  { %183 = shalt.err (!%p180_p4)
}
   0xb   :  { %17 = dma.hbm_to_vmem [thread:$0]  %s253_s0, 128, %s15_s7, [#allocation3]  }
   0xc   :  { %204 = dma.done.wait [#allocation3], 128  }
   0xd   :  { %205 = vsyncadd [#allocation3], 4294967168  ;;  %v21_v0 = vld [vmem:[#allocation2] sm:$0xff]  ;;  %v209_v13 = vmov 683565275   ;;  %s215_s0 = smov [#allocation5]  }
   0xe   :  { %v229_v1 = vmul.f32 0.60415244, %v21_v0  ;;  %v210_v15 = vmov 2475754826   ;;  %v211_v17 = vmov 2131351028  }
   0xf   :  { %v212_v19 = vmov 2102212464   ;;  %v213_v21 = vmov 920167782   ;;  %v214_v28 = vmov 1326507024  }
  0x10   :  { %v26_v2 = vand.u32 2139095040, %v229_v1  ;;  %v23_v4 = vand.u32 2147483647, %v229_v1  ;;  %vm25_vm7 = vcmp.lt.s32.totalorder %v229_v1, 0  ;;  %vm115_vm12 = vweird.f32 %v229_v1  ;;  %s135_s11 = sshll.u32 %s215_s0, 4  ;;  %s136_s11 = int_to_ptr.vmem [resolvable:$true] %s135_s11 }
  0x11   :  { %s184_s12 = scalar_lea.vmem %s136_s11, 128  ;;  %p189_p6 = scmp.lt.s32.totalorder %s136_s11, %s136_s11 }
  0x12   :  { %v27_v3 = vshrl.u32 %v26_v2, 23  ;;  %v30_v7 = vand.u32 8388607, %v23_v4  ;;  %vm24_vm8 = vcmp.le.f32.partialorder %v23_v4, 0.7853982  ;;  %p185_p5 = scmp.ne.s32.totalorder %s136_s11, %s184_s12  ;;  %p190_p7 = scmp.lt.s32.totalorder %s184_s12, %s184_s12 }
  0x14   :  { %v144_v5 = vadd.s32 4294967169, %v27_v3  ;;  %v31_v10 = vor.u32 8388608, %v30_v7  ;;  %p191_p8 = por %p190_p7, %p189_p6 }
  0x16   :  { %v33_v6 = vadd.s32 1, %v144_v5  ;;  %v71_v30 = vshll.u32 %v31_v10, 8  ;;  %p192_p9 = pnand %p191_p8, %p185_p5 }
  0x18   :  { %vm34_vm0 = vcmp.gt.s32.totalorder %v33_v6, 0 }
  0x19   :  { %v35_v8 = vsel %vm34_vm0, %v33_v6, 0 }
  0x1a   :  { %v37_v9 = vand.u32 31, %v35_v8  ;;  %v36_v11 = vshrl.u32 %v35_v8, 5 }
  0x1c   :  { %v38_v12 = vsub.s32 32, %v37_v9  ;;  %v40_v14 = vshll.u32 %v209_v13, %v37_v9  ;;  %v43_v16 = vshll.u32 %v210_v15, %v37_v9  ;;  %v46_v18 = vshll.u32 %v211_v17, %v37_v9 }
  0x1d   :  { %v49_v20 = vshll.u32 %v212_v19, %v37_v9  ;;  %v52_v22 = vshll.u32 %v213_v21, %v37_v9  ;;  %vm55_vm1 = vcmp.lt.s32.totalorder %v36_v11, 1  ;;  %vm58_vm2 = vcmp.lt.s32.totalorder %v36_v11, 4 }
  0x1e   :  { %v39_v23 = vshrl.u32 %v209_v13, %v38_v12  ;;  %v41_v24 = vshrl.u32 %v210_v15, %v38_v12  ;;  %v44_v25 = vshrl.u32 %v211_v17, %v38_v12  ;;  %v47_v26 = vshrl.u32 %v212_v19, %v38_v12 }
  0x1f   :  { %v50_v27 = vshrl.u32 %v213_v21, %v38_v12  ;;  %v53_v29 = vshrl.u32 %v214_v28, %v38_v12  ;;  %vm56_vm3 = vcmp.lt.s32.totalorder %v36_v11, 2  ;;  %vm57_vm4 = vcmp.lt.s32.totalorder %v36_v11, 3 }
  0x20   :  { %v42_v31 = vor.u32 %v41_v24, %v40_v14  ;;  %v45_v32 = vor.u32 %v44_v25, %v43_v16  ;;  %v48_v33 = vor.u32 %v47_v26, %v46_v18 }
  0x21   :  { %v51_v34 = vor.u32 %v50_v27, %v49_v20  ;;  %v54_v35 = vor.u32 %v53_v29, %v52_v22 }
  0x22   :  { %v59_v36 = vsel %vm55_vm1, %v39_v23, %v42_v31  ;;  %v60_v37 = vsel %vm58_vm2, %v48_v33, 2102212464  ;;  %v63_v38 = vsel %vm55_vm1, %v42_v31, %v45_v32  ;;  %v67_v39 = vsel %vm55_vm1, %v45_v32, %v48_v33 }
  0x23   :  { %v61_v40 = vsel %vm57_vm4, %v45_v32, %v60_v37  ;;  %v64_v41 = vsel %vm58_vm2, %v51_v34, 920167782  ;;  %v68_v42 = vsel %vm58_vm2, %v54_v35, 1326507024 }
  0x24   :  { %v65_v43 = vsel %vm57_vm4, %v48_v33, %v64_v41  ;;  %v69_v44 = vsel %vm57_vm4, %v51_v34, %v68_v42  ;;  %v62_v45 = vsel %vm56_vm3, %v59_v36, %v61_v40 }
  0x25   :  { %v66_v46 = vsel %vm56_vm3, %v63_v38, %v65_v43  ;;  %v70_v47 = vsel %vm56_vm3, %v67_v39, %v69_v44  ;;  %v78_v52 = vmul.u32 %v71_v30, %v62_v45 }
  0x26   :  { %v235_v48 = vmul.u32.u64.low %v71_v30, %v70_v47  ;;  %v236_v49 = vmul.u32.u64.high %v71_v30, %v70_v47, %v235_v48  ;;  %v238_v50 = vmul.u32.u64.low %v71_v30, %v66_v46  ;;  %v239_v51 = vmul.u32.u64.high %v71_v30, %v66_v46, %v238_v50 }
  0x28   :  { %vm80_vm5 = vc.u32 %v236_v49, %v238_v50  ;;  %v81_v53 = vadd.s32 1, %v239_v51  ;;  %v79_v0 = vadd.s32 %v238_v50, %v236_v49 }
  0x2a   :  { %v82_v54 = vsel %vm80_vm5, %v81_v53, %v239_v51 }
  0x2b   :  { %v83_v55 = vadd.s32 %v82_v54, %v78_v52 }
  0x2d   :  { %v84_v56 = vadd.s32 536870912, %v83_v55 }
  0x2f   :  { %v85_v57 = vshrl.u32 %v84_v56, 30 }
  0x31   :  { %v86_v58 = vshll.u32 %v85_v57, 30  ;;  %v109_v17 = vsub.s32 4, %v85_v57 }
  0x33   :  { %v87_v59 = vsub.s32 %v83_v55, %v86_v58  ;;  %v110_v19 = vsel %vm25_vm7, %v109_v17, %v85_v57 }
  0x34   :  { %v112_v20 = vsel %vm24_vm8, 0, %v110_v19 }
  0x35   :  { %v89_v60 = vsub.s32 0, %v87_v59  ;;  %v116_v21 = vand.u32 3, %v112_v20 }
  0x37   :  { %v145_v61 = vmin.u32 %v89_v60, %v87_v59  ;;  %vm121_vm9 = vcmp.eq.s32.totalorder %v116_v21, 2  ;;  %vm118_vm10 = vcmp.eq.s32.totalorder %v116_v21, 0  ;;  %vm117_vm11 = vcmp.lt.s32.totalorder %v116_v21, 2 }
  0x39   :  { %v91_v62 = vclz %v145_v61 }
  0x3b   :  { %v146_v63 = vadd.s32 4294967294, %v91_v62 }
  0x3d   :  { %vm147_vm6 = vcmp.lt.s32.totalorder %v146_v63, 0 }
  0x3e   :  { %v94_v2 = vsel %vm147_vm6, 0, %v146_v63 }
  0x3f   :  { %v95_v3 = vsub.s32 32, %v94_v2  ;;  %v96_v5 = vshll.u32 %v87_v59, %v94_v2  ;;  %v99_v6 = vsub.s32 4294967266, %v94_v2 }
  0x41   :  { %v97_v7 = vshrl.u32 %v79_v0, %v95_v3  ;;  %v100_v8 = vadd.s32 127, %v99_v6 }
  0x43   :  { %v98_v9 = vor.u32 %v97_v7, %v96_v5  ;;  %v101_v10 = vshll.u32 %v100_v8, 23 }
  0x45   :  { %v102_v11 = vor.u32 4788187, %v101_v10  ;;  %v105_v12 = vcvt.s32.f32 %v98_v9 }
  0x47   :  { %v103_v13 = vand.u32 2147483647, %v102_v11 }
  0x49   :  { %v106_v14 = vmul.f32 %v105_v12, %v103_v13 }
  0x4b   :  { %v107_v15 = vxor.u32 2147483648, %v106_v14 }
  0x4d   :  { %v108_v16 = vsel %vm25_vm7, %v107_v15, %v106_v14 }
  0x4e   :  { %v111_v18 = vsel %vm24_vm8, %v229_v1, %v108_v16 }
  0x4f   :  { %160 = vcosq.f32 %v111_v18 }
  0x50   :  { %162 = vsinq.f32 %v111_v18 }
  0x5c   :  { %v161_v22 = vpop.eup %160 }
  0x5d   :  { %v163_v23 = vpop.eup %162  ;;  %v122_v24 = vxor.u32 2147483648, %v161_v22 }
  0x5e   :  { %v119_v25 = vxor.u32 2147483648, %v163_v23 }
  0x5f   :  { %v123_v4 = vsel %vm121_vm9, %v122_v24, %v163_v23 }
  0x60   :  { %v120_v26 = vsel %vm118_vm10, %v161_v22, %v119_v25 }
  0x61   :  { %v124_v27 = vsel %vm117_vm11, %v120_v26, %v123_v4 }
  0x62   :  { %v125_v28 = vsel %vm115_vm12, nan, %v124_v27 }
  0x63   :  { %v126_v29 = vmul.f32 0.5, %v125_v28 }
  0x65   :  { %v127_v30 = vadd.f32 0.5, %v126_v29 }
  0x67   :  { %128 = vst [vmem:[#allocation5] sm:$0xff] %v127_v30 }
  0x68   :  { %195 = shalt.err (!%p192_p9)
}
  0x69   :  { %138 = dma.vmem_to_hbm [thread:$0]  %s136_s11, 128, %s254_s1, [#allocation4]  }
  0x6a   :  { %206 = dma.done.wait [#allocation4], 128  }
  0x6b   :  { %207 = vsyncadd [#allocation4], 4294967168 }
  0x6c   :  { %142 = vsyncpa [#allocation3], 1 }
  0x6d   :  { %143 = vsyncpa [#allocation4], 1 }

</bundles_post_ra>
